<compile_context>
chip_gen: v7x
topology: tpu7x:2x2x1
jax: 0.10.0
libtpu: 0.0.40
codegen_flags: <defaults>
</compile_context>

<pallas_src>
import functools

import jax
import jax.numpy as jnp
from jax.experimental import pallas as pl
from jax.experimental.pallas import tpu as pltpu


def _cosine_cutoff_kernel(x_ref, o_ref, *, cutoff: float):
    # Compute in f32 regardless of input dtype (single up/down cast; matters
    # on v5e where the VPU/EUP have no bf16 path).
    x = x_ref[...].astype(jnp.float32)
    # Clamp before the cosine: bounds the argument at pi so d >> cutoff never
    # triggers the expensive large-argument range reduction.  Only affects the
    # branch that the where() discards, so semantics are unchanged.
    xc = jnp.minimum(x, cutoff)
    env = 0.5 * (jnp.cos((jnp.pi / cutoff) * xc) + 1.0)
    o_ref[...] = jnp.where(x < cutoff, env, 0.0).astype(o_ref.dtype)


def _cosine_cutoff_jnp(x, cutoff: float, dtype):
    """Plain-jnp path for tiny ragged tails (< one lane-width of elements)."""
    xf = x.astype(jnp.float32)
    env = 0.5 * (jnp.cos((jnp.pi / cutoff) * jnp.minimum(xf, cutoff)) + 1.0)
    return jnp.where(xf < cutoff, env, 0.0).astype(dtype)


def _sublane_multiple(dtype) -> int:
    # f32 -> 8, bf16/f16 -> 16, int8/fp8 -> 32 sublane packing.
    return {4: 8, 2: 16, 1: 32}.get(jnp.dtype(dtype).itemsize, 8)


def _run_2d(x2d: jax.Array, cutoff: float, block_rows: int) -> jax.Array:
    rows, lane = x2d.shape
    dtype = x2d.dtype
    sub = _sublane_multiple(dtype)

    if rows <= block_rows:
        tile_r = rows                                   # full extent -> always legal
    else:
        tile_r = max(sub, (block_rows // sub) * sub)    # sublane-aligned stripe

    kernel = functools.partial(_cosine_cutoff_kernel, cutoff=float(cutoff))
    return pl.pallas_call(
        kernel,
        out_shape=jax.ShapeDtypeStruct((rows, lane), dtype),
        grid=(pl.cdiv(rows, tile_r),),                  # partial last stripe is masked
        in_specs=[pl.BlockSpec((tile_r, lane), lambda i: (i, 0))],
        out_specs=pl.BlockSpec((tile_r, lane), lambda i: (i, 0)),
        compiler_params=pltpu.CompilerParams(
            dimension_semantics=("parallel",)),
    )(x2d)


def cosine_cutoff(edge_dist: jax.Array, cutoff: float,
                  *, block_rows: int = 1024) -> jax.Array:
    """Elementwise cosine cutoff on an arbitrarily-shaped distance array."""
    orig_shape = edge_dist.shape
    dtype = edge_dist.dtype
    n = edge_dist.size
    if n == 0:
        return edge_dist

    flat = edge_dist.reshape(-1)

    # Fast path: pick the widest lane-dense width that divides n exactly so
    # the reshape is a pure view (no pad-in / slice-out HBM copies).
    lane = next((w for w in (512, 256, 128) if n % w == 0), None)
    if lane is not None:
        out = _run_2d(flat.reshape(n // lane, lane), cutoff, block_rows)
        return out.reshape(orig_shape)

    # Ragged path: bulk through the kernel, <512-element tail in plain jnp.
    lane = 512
    n_main = (n // lane) * lane
    if n_main == 0:
        return _cosine_cutoff_jnp(flat, cutoff, dtype).reshape(orig_shape)
    out_main = _run_2d(flat[:n_main].reshape(n_main // lane, lane),
                       cutoff, block_rows).reshape(-1)
    out_tail = _cosine_cutoff_jnp(flat[n_main:], cutoff, dtype)
    return jnp.concatenate([out_main, out_tail]).reshape(orig_shape)


def cosine_cutoff_ref(edge_dist, cutoff: float):
    x = edge_dist.astype(jnp.float32)
    env = 0.5 * (jnp.cos(jnp.pi * x / cutoff) + 1.0)
    return jnp.where(x < cutoff, env, 0.0).astype(edge_dist.dtype)


if __name__ == "__main__":
    key = jax.random.PRNGKey(0)
    cutoff = 5.0

    # Edge distances in [0, 2*cutoff) so both branches of the cutoff are hit.
    k1, k2 = jax.random.split(key)

    # Fast (zero-copy) path: size divisible by the lane width.
    edge_dist = jax.random.uniform(k1, (4096,), dtype=jnp.float32,
                                   minval=0.0, maxval=2.0 * cutoff)
    out = jax.block_until_ready(cosine_cutoff(edge_dist, cutoff))
    ref = cosine_cutoff_ref(edge_dist, cutoff)
    assert out.shape == edge_dist.shape and out.dtype == edge_dist.dtype
    assert jnp.allclose(out, ref, atol=1e-6, rtol=1e-6)

    # Ragged path: size not divisible by 128 -> main kernel + jnp tail.
    edge_dist_r = jax.random.uniform(k2, (1000,), dtype=jnp.float32,
                                     minval=0.0, maxval=2.0 * cutoff)
    out_r = jax.block_until_ready(cosine_cutoff(edge_dist_r, cutoff))
    ref_r = cosine_cutoff_ref(edge_dist_r, cutoff)
    assert out_r.shape == edge_dist_r.shape and out_r.dtype == edge_dist_r.dtype
    assert jnp.allclose(out_r, ref_r, atol=1e-6, rtol=1e-6)

    print("KERNEL_OK")
</pallas_src>

<mosaic_0001>
module attributes {stable_mosaic.version = 11 : i64} {
  func.func @_cosine_cutoff_kernel(%arg0: i32, %arg1: memref<8x512xf32, #tpu.memory_space<vmem>>, %arg2: memref<8x512xf32, #tpu.memory_space<vmem>>) attributes {dimension_semantics = [#tpu.dimension_semantics<parallel>], iteration_bounds = array<i64: 1>, scalar_prefetch = 0 : i64, scratch_operands = 0 : i64, tpu.core_type = #tpu.core_type<tc>, window_params = [{transform_indices = @transform_0, window_bounds = array<i64: 8, 512>}, {transform_indices = @transform_1, window_bounds = array<i64: 8, 512>}]} {
    %c0 = arith.constant 0 : index
    %c0_0 = arith.constant 0 : index
    %0 = vector.load %arg1[%c0, %c0_0] : memref<8x512xf32, #tpu.memory_space<vmem>>, vector<8x512xf32>
    %cst = arith.constant 5.000000e+00 : f32
    %1 = vector.broadcast %cst : f32 to vector<8x512xf32>
    %2 = arith.minimumf %0, %1 : vector<8x512xf32>
    %cst_1 = arith.constant 0.628318548 : f32
    %3 = vector.broadcast %cst_1 : f32 to vector<8x512xf32>
    %4 = arith.mulf %3, %2 : vector<8x512xf32>
    %5 = math.cos %4 : vector<8x512xf32>
    %cst_2 = arith.constant 1.000000e+00 : f32
    %6 = vector.broadcast %cst_2 : f32 to vector<8x512xf32>
    %7 = arith.addf %5, %6 : vector<8x512xf32>
    %cst_3 = arith.constant 5.000000e-01 : f32
    %8 = vector.broadcast %cst_3 : f32 to vector<8x512xf32>
    %9 = arith.mulf %8, %7 : vector<8x512xf32>
    %cst_4 = arith.constant 5.000000e+00 : f32
    %10 = vector.broadcast %cst_4 : f32 to vector<8x512xf32>
    %11 = arith.cmpf olt, %0, %10 : vector<8x512xf32>
    %cst_5 = arith.constant 0.000000e+00 : f32
    %12 = vector.broadcast %cst_5 : f32 to vector<8x512xf32>
    %13 = arith.select %11, %9, %12 : vector<8x512xi1>, vector<8x512xf32>
    %c0_6 = arith.constant 0 : index
    %c0_7 = arith.constant 0 : index
    %14 = vector.load %arg2[%c0_6, %c0_7] : memref<8x512xf32, #tpu.memory_space<vmem>>, vector<8x512xf32>
    tpu.vector_store %arg2[%c0_6, %c0_7], %13 {strides = array<i32>} : memref<8x512xf32, #tpu.memory_space<vmem>>, vector<8x512xf32>,
    return
  }
  func.func @transform_0(%arg0: i32) -> (i32, i32) {
    %c0_i32 = arith.constant 0 : i32
    %c0_i32_0 = arith.constant 0 : i32
    return %arg0, %c0_i32 : i32, i32
  }
  func.func @transform_1(%arg0: i32) -> (i32, i32) {
    %c0_i32 = arith.constant 0 : i32
    %c0_i32_0 = arith.constant 0 : i32
    return %arg0, %c0_i32 : i32, i32
  }
}

</mosaic_0001>

<bundles_post_ra>
// kernel: tpu_custom_call.1
= control target key start
LH: loop header
LB: loop body
LE: loop exit
PB: predicated region body
PF: predicated region fallthrough
CT: control target
= control target key end

     0   :  { %6 = vsyncpa [#allocation3], 0  ;;  %s944_s0 = inlined_call_operand.hbm [shape: f32[8,512], index: 0, kind: input, shape index: {}]   ;;  %s945_s1 = inlined_call_operand.hbm [shape: f32[8,512], index: 1, kind: output, shape index: {}]  }
   0x1   :  { %7 = vsyncpa [#allocation4], 0  ;;  %s584_s6 = smov [#allocation2]   ;;  %s536_s10 = scalar_lea.hbm %s944_s0, 512 }
   0x2   :  { %s14_s7 = sshll.u32 %s584_s6, 4  ;;  %p537_p0 = scmp.ne.s32.totalorder %s944_s0, %s536_s10  ;;  %s15_s7 = int_to_ptr.vmem [resolvable:$true] %s14_s7 }
   0x3   :  { %p540_p1 = scmp.lt.u32.totalorder %s536_s10, %s944_s0 }
   0x5   :  { %p542_p2 = pnand %p540_p1, %p537_p0 }
   0x7   :  { %545 = shalt.err (!%p542_p2)
}
   0x8   :  { %s546_s15 = scalar_lea.vmem %s15_s7, 512  ;;  %p551_p4 = scmp.lt.s32.totalorder %s15_s7, %s15_s7 }
   0x9   :  { %p547_p3 = scmp.ne.s32.totalorder %s15_s7, %s546_s15  ;;  %p552_p5 = scmp.lt.s32.totalorder %s546_s15, %s546_s15 }
   0xb   :  { %p553_p6 = por %p552_p5, %p551_p4 }
   0xd   :  { %p554_p7 = pnand %p553_p6, %p547_p3 }
   0xf   :  { %557 = shalt.err (!%p554_p7)
}
  0x10   :  { %17 = dma.hbm_to_vmem [thread:$0]  %s944_s0, 512, %s15_s7, [#allocation3]  }
  0x11   :  { %580 = dma.done.wait [#allocation3], 512  }
  0x12   :  { %581 = vsyncadd [#allocation3], 4294966784  ;;  %v614_v0 = vld [vmem:[#allocation2] sm:$0xff]  ;;  %v616_v1 = vld [vmem:[#allocation2 + $0x8] sm:$0xff]  ;;  %v585_v39 = vmov 683565275  }
  0x13   :  { %v618_v2 = vld [vmem:[#allocation2 + $0x10] sm:$0xff]  ;;  %v25_v3 = vmin.f32 %v614_v0, 5.0  ;;  %v26_v4 = vmin.f32 %v616_v1, 5.0  ;;  %v633_v13 = vld [vmem:[#allocation2 + $0x18] sm:$0xff]  ;;  %v586_v41 = vmov 2475754826  }
  0x14   :  { %v27_v5 = vmin.f32 %v618_v2, 5.0  ;;  %v28_v20 = vmin.f32 %v633_v13, 5.0  ;;  %v587_v43 = vmov 2131351028   ;;  %v588_v45 = vmov 2102212464  }
  0x15   :  { %v623_v6 = vmul.f32 0.62831855, %v25_v3  ;;  %v625_v7 = vmul.f32 0.62831855, %v26_v4  ;;  %v589_v47 = vmov 920167782  }
  0x16   :  { %v627_v8 = vmul.f32 0.62831855, %v27_v5  ;;  %v641_v28 = vmul.f32 0.62831855, %v28_v20  ;;  %v590_v55 = vmov 1326507024  }
  0x17   :  { %v33_v9 = vand.u32 2147483647, %v623_v6  ;;  %v36_v10 = vand.u32 2139095040, %v623_v6  ;;  %v136_v11 = vand.u32 2147483647, %v625_v7  ;;  %v139_v12 = vand.u32 2139095040, %v625_v7 }
  0x18   :  { %v242_v18 = vand.u32 2139095040, %v627_v8  ;;  %v239_v33 = vand.u32 2147483647, %v627_v8  ;;  %vm35_vm13 = vcmp.lt.s32.totalorder %v623_v6, 0  ;;  %s591_s0 = smov [#allocation5]  }
  0x19   :  { %v37_v14 = vshrl.u32 %v36_v10, 23  ;;  %v40_v15 = vand.u32 8388607, %v33_v9  ;;  %v140_v16 = vshrl.u32 %v139_v12, 23  ;;  %v143_v17 = vand.u32 8388607, %v136_v11 }
  0x1a   :  { %v243_v22 = vshrl.u32 %v242_v18, 23  ;;  %s471_s18 = sshll.u32 %s591_s0, 4  ;;  %s472_s18 = int_to_ptr.vmem [resolvable:$true] %s471_s18 }
  0x1b   :  { %v480_v19 = vadd.s32 4294967169, %v37_v14  ;;  %v484_v21 = vadd.s32 4294967169, %v140_v16  ;;  %v41_v24 = vor.u32 8388608, %v40_v15  ;;  %v144_v25 = vor.u32 8388608, %v143_v17  ;;  %s558_s19 = scalar_lea.vmem %s472_s18, 512  ;;  %p563_p9 = scmp.lt.s32.totalorder %s472_s18, %s472_s18 }
  0x1c   :  { %v488_v27 = vadd.s32 4294967169, %v243_v22  ;;  %p559_p8 = scmp.ne.s32.totalorder %s472_s18, %s558_s19  ;;  %p564_p10 = scmp.lt.s32.totalorder %s558_s19, %s558_s19 }
  0x1d   :  { %v43_v23 = vadd.s32 1, %v480_v19  ;;  %v146_v26 = vadd.s32 1, %v484_v21  ;;  %v644_v34 = vshll.u32 %v41_v24, 8  ;;  %v646_v36 = vshll.u32 %v144_v25, 8 }
  0x1e   :  { %v648_v37 = vadd.s32 1, %v488_v27  ;;  %p565_p11 = por %p564_p10, %p563_p9 }
  0x1f   :  { %vm44_vm0 = vcmp.gt.s32.totalorder %v43_v23, 0  ;;  %vm147_vm1 = vcmp.gt.s32.totalorder %v146_v26, 0 }
  0x20   :  { %v45_v29 = vsel %vm44_vm0, %v43_v23, 0  ;;  %v148_v32 = vsel %vm147_vm1, %v146_v26, 0  ;;  %vm250_vm6 = vcmp.gt.s32.totalorder %v648_v37, 0  ;;  %p566_p12 = pnand %p565_p11, %p559_p8 }
  0x21   :  { %v46_v30 = vshrl.u32 %v45_v29, 5  ;;  %v47_v31 = vand.u32 31, %v45_v29  ;;  %v150_v35 = vand.u32 31, %v148_v32  ;;  %v655_v49 = vshrl.u32 %v148_v32, 5 }
  0x23   :  { %v48_v38 = vsub.s32 32, %v47_v31  ;;  %v50_v40 = vshll.u32 %v585_v39, %v47_v31  ;;  %v53_v42 = vshll.u32 %v586_v41, %v47_v31  ;;  %v56_v44 = vshll.u32 %v587_v43, %v47_v31 }
  0x24   :  { %v59_v46 = vshll.u32 %v588_v45, %v47_v31  ;;  %v62_v48 = vshll.u32 %v589_v47, %v47_v31  ;;  %vm65_vm2 = vcmp.lt.s32.totalorder %v46_v30, 1  ;;  %vm66_vm3 = vcmp.lt.s32.totalorder %v46_v30, 2 }
  0x25   :  { %v49_v50 = vshrl.u32 %v585_v39, %v48_v38  ;;  %v51_v51 = vshrl.u32 %v586_v41, %v48_v38  ;;  %v54_v52 = vshrl.u32 %v587_v43, %v48_v38  ;;  %v57_v53 = vshrl.u32 %v588_v45, %v48_v38 }
  0x26   :  { %v60_v54 = vshrl.u32 %v589_v47, %v48_v38  ;;  %v63_v56 = vshrl.u32 %v590_v55, %v48_v38  ;;  %vm68_vm4 = vcmp.lt.s32.totalorder %v46_v30, 4  ;;  %v151_v60 = vsub.s32 32, %v150_v35 }
  0x27   :  { %v52_v57 = vor.u32 %v51_v51, %v50_v40  ;;  %v55_v58 = vor.u32 %v54_v52, %v53_v42  ;;  %v58_v59 = vor.u32 %v57_v53, %v56_v44  ;;  %vm67_vm5 = vcmp.lt.s32.totalorder %v46_v30, 3 }
  0x28   :  { %v61_v61 = vor.u32 %v60_v54, %v59_v46  ;;  %v64_v62 = vor.u32 %v63_v56, %v62_v48  ;;  %v153_v63 = vshll.u32 %v585_v39, %v150_v35  ;;  %v156_v16 = vshll.u32 %v586_v41, %v150_v35 }
  0x29   :  { %v69_v3 = vsel %vm65_vm2, %v49_v50, %v52_v57  ;;  %v70_v4 = vsel %vm68_vm4, %v58_v59, 2102212464  ;;  %v73_v5 = vsel %vm65_vm2, %v52_v57, %v55_v58  ;;  %v77_v10 = vsel %vm65_vm2, %v55_v58, %v58_v59 }
  0x2a   :  { %v71_v12 = vsel %vm67_vm5, %v55_v58, %v70_v4  ;;  %v74_v14 = vsel %vm68_vm4, %v61_v61, 920167782  ;;  %v78_v15 = vsel %vm68_vm4, %v64_v62, 1326507024  ;;  %v152_v19 = vshrl.u32 %v585_v39, %v151_v60 }
  0x2b   :  { %v75_v17 = vsel %vm67_vm5, %v58_v59, %v74_v14  ;;  %v79_v18 = vsel %vm67_vm5, %v61_v61, %v78_v15  ;;  %v154_v20 = vshrl.u32 %v586_v41, %v151_v60  ;;  %v72_v21 = vsel %vm66_vm3, %v69_v3, %v71_v12 }
  0x2c   :  { %v76_v22 = vsel %vm66_vm3, %v73_v5, %v75_v17  ;;  %v80_v23 = vsel %vm66_vm3, %v77_v10, %v79_v18  ;;  %v157_v24 = vshrl.u32 %v587_v43, %v151_v60  ;;  %v159_v38 = vshll.u32 %v587_v43, %v150_v35 }
  0x2d   :  { %v676_v25 = vmul.u32.u64.low %v644_v34, %v80_v23  ;;  %v677_v26 = vmul.u32.u64.high %v644_v34, %v80_v23, %v676_v25  ;;  %v680_v27 = vmul.u32.u64.low %v644_v34, %v76_v22  ;;  %v681_v29 = vmul.u32.u64.high %v644_v34, %v76_v22, %v680_v27 }
  0x2e   :  { %v155_v31 = vor.u32 %v154_v20, %v153_v63  ;;  %v158_v32 = vor.u32 %v157_v24, %v156_v16  ;;  %v160_v40 = vshrl.u32 %v588_v45, %v151_v60  ;;  %v162_v30 = vshll.u32 %v588_v45, %v150_v35 }
  0x2f   :  { %v163_v42 = vshrl.u32 %v589_v47, %v151_v60  ;;  %v165_v44 = vshll.u32 %v589_v47, %v150_v35  ;;  %v166_v46 = vshrl.u32 %v590_v55, %v151_v60  ;;  %v88_v48 = vmul.u32 %v644_v34, %v72_v21 }
  0x30   :  { %v161_v50 = vor.u32 %v160_v40, %v159_v38  ;;  %vm168_vm7 = vcmp.lt.s32.totalorder %v655_v49, 1  ;;  %vm169_vm8 = vcmp.lt.s32.totalorder %v655_v49, 2  ;;  %vm90_vm9 = vc.u32 %v677_v26, %v680_v27 }
  0x31   :  { %v91_v51 = vadd.s32 1, %v681_v29  ;;  %v164_v52 = vor.u32 %v163_v42, %v162_v30  ;;  %vm170_vm10 = vcmp.lt.s32.totalorder %v655_v49, 3  ;;  %v167_v53 = vor.u32 %v166_v46, %v165_v44 }
  0x32   :  { %vm171_vm11 = vcmp.lt.s32.totalorder %v655_v49, 4  ;;  %v172_v35 = vsel %vm168_vm7, %v152_v19, %v155_v31  ;;  %v176_v54 = vsel %vm168_vm7, %v155_v31, %v158_v32  ;;  %v180_v58 = vsel %vm168_vm7, %v158_v32, %v161_v50 }
  0x33   :  { %v92_v34 = vsel %vm90_vm9, %v91_v51, %v681_v29  ;;  %v173_v56 = vsel %vm171_vm11, %v161_v50, 2102212464  ;;  %v177_v57 = vsel %vm171_vm11, %v164_v52, 920167782  ;;  %v181_v62 = vsel %vm171_vm11, %v167_v53, 1326507024 }
  0x34   :  { %v93_v59 = vadd.s32 %v92_v34, %v88_v48  ;;  %v174_v60 = vsel %vm170_vm10, %v158_v32, %v173_v56  ;;  %v178_v61 = vsel %vm170_vm10, %v161_v50, %v177_v57  ;;  %v182_v4 = vsel %vm170_vm10, %v164_v52, %v181_v62 }
  0x35   :  { %v175_v63 = vsel %vm169_vm8, %v172_v35, %v174_v60  ;;  %v179_v3 = vsel %vm169_vm8, %v176_v54, %v178_v61  ;;  %v251_v5 = vsel %vm250_vm6, %v648_v37, 0  ;;  %v183_v12 = vsel %vm169_vm8, %v180_v58, %v182_v4 }
  0x36   :  { %v94_v10 = vadd.s32 536870912, %v93_v59  ;;  %v709_v14 = vmul.u32.u64.low %v646_v36, %v179_v3  ;;  %v710_v15 = vmul.u32.u64.high %v646_v36, %v179_v3, %v709_v14  ;;  %v246_v18 = vand.u32 8388607, %v239_v33 }
  0x37   :  { %v714_v16 = vmul.u32.u64.low %v646_v36, %v183_v12  ;;  %v715_v17 = vmul.u32.u64.high %v646_v36, %v183_v12, %v714_v16  ;;  %v253_v20 = vand.u32 31, %v251_v5  ;;  %v345_v37 = vand.u32 2139095040, %v641_v28 }
  0x38   :  { %v719_v19 = vshrl.u32 %v94_v10, 30  ;;  %v191_v49 = vmul.u32 %v646_v36, %v175_v63  ;;  %v194_v22 = vadd.s32 1, %v710_v15  ;;  %v247_v24 = vor.u32 8388608, %v246_v18 }
  0x39   :  { %v254_v23 = vsub.s32 32, %v253_v20  ;;  %vm193_vm12 = vc.u32 %v715_v17, %v709_v14  ;;  %v252_v31 = vshrl.u32 %v251_v5, 5  ;;  %v346_v32 = vshrl.u32 %v345_v37, 23 }
  0x3a   :  { %v96_v21 = vshll.u32 %v719_v19, 30  ;;  %v195_v29 = vsel %vm193_vm12, %v194_v22, %v710_v15  ;;  %v256_v40 = vshll.u32 %v585_v39, %v253_v20  ;;  %v259_v30 = vshll.u32 %v586_v41, %v253_v20 }
  0x3b   :  { %v196_v38 = vadd.s32 %v195_v29, %v191_v49  ;;  %v257_v36 = vshrl.u32 %v586_v41, %v254_v23  ;;  %v260_v44 = vshrl.u32 %v587_v43, %v254_v23  ;;  %v262_v46 = vshll.u32 %v587_v43, %v253_v20 }
  0x3c   :  { %v727_v25 = vsub.s32 %v93_v59, %v96_v21  ;;  %v263_v48 = vshrl.u32 %v588_v45, %v254_v23  ;;  %v89_v50 = vadd.s32 %v680_v27, %v677_v26  ;;  %v265_v52 = vshll.u32 %v588_v45, %v253_v20 }
  0x3d   :  { %v197_v51 = vadd.s32 536870912, %v196_v38  ;;  %v740_v53 = vshll.u32 %v247_v24, 8  ;;  %v255_v54 = vshrl.u32 %v585_v39, %v254_v23  ;;  %vm274_vm14 = vcmp.lt.s32.totalorder %v252_v31, 4 }
  0x3e   :  { %v99_v42 = vsub.s32 0, %v727_v25  ;;  %v492_v34 = vadd.s32 4294967169, %v346_v32  ;;  %v258_v57 = vor.u32 %v257_v36, %v256_v40  ;;  %v266_v58 = vshrl.u32 %v589_v47, %v254_v23 }
  0x3f   :  { %v745_v56 = vshrl.u32 %v197_v51, 30  ;;  %v268_v26 = vshll.u32 %v589_v47, %v253_v20  ;;  %v261_v59 = vor.u32 %v260_v44, %v259_v30  ;;  %v264_v60 = vor.u32 %v263_v48, %v262_v46 }
  0x40   :  { %v481_v35 = vmin.u32 %v99_v42, %v727_v25  ;;  %v269_v61 = vshrl.u32 %v590_v55, %v254_v23  ;;  %v267_v63 = vor.u32 %v266_v58, %v265_v52  ;;  %vm271_vm15 = vcmp.lt.s32.totalorder %v252_v31, 1 }
  0x41   :  { %v199_v62 = vshll.u32 %v745_v56, 30  ;;  %vm273_vm0 = vcmp.lt.s32.totalorder %v252_v31, 3  ;;  %vm272_vm1 = vcmp.lt.s32.totalorder %v252_v31, 2  ;;  %v276_v5 = vsel %vm274_vm14, %v264_v60, 2102212464 }
  0x42   :  { %v101_v27 = vclz %v481_v35  ;;  %v270_v4 = vor.u32 %v269_v61, %v268_v26  ;;  %v119_v10 = vsub.s32 4, %v719_v19  ;;  %v275_v15 = vsel %vm271_vm15, %v255_v54, %v258_v57 }
  0x43   :  { %v753_v12 = vsub.s32 %v196_v38, %v199_v62  ;;  %v280_v16 = vsel %vm274_vm14, %v267_v63, 920167782  ;;  %v279_v18 = vsel %vm271_vm15, %v258_v57, %v261_v59  ;;  %v277_v22 = vsel %vm273_vm0, %v261_v59, %v276_v5 }
  0x44   :  { %v482_v3 = vadd.s32 4294967294, %v101_v27  ;;  %v281_v20 = vsel %vm273_vm0, %v264_v60, %v280_v16  ;;  %v284_v37 = vsel %vm274_vm14, %v270_v4, 1326507024  ;;  %v283_v23 = vsel %vm271_vm15, %v261_v59, %v264_v60 }
  0x45   :  { %v202_v21 = vsub.s32 0, %v753_v12  ;;  %v285_v38 = vsel %vm273_vm0, %v267_v63, %v284_v37  ;;  %v120_v40 = vsel %vm35_vm13, %v119_v10, %v719_v19  ;;  %v282_v30 = vsel %vm272_vm1, %v279_v18, %v281_v20 }
  0x46   :  { %vm483_vm2 = vcmp.lt.s32.totalorder %v482_v3, 0  ;;  %v342_v42 = vand.u32 2147483647, %v641_v28  ;;  %v278_v48 = vsel %vm272_vm1, %v275_v15, %v277_v22  ;;  %v286_v51 = vsel %vm272_vm1, %v283_v23, %v285_v38 }
  0x47   :  { %v104_v49 = vsel %vm483_vm2, 0, %v482_v3  ;;  %v485_v36 = vmin.u32 %v202_v21, %v753_v12  ;;  %v774_v52 = vmul.u32.u64.low %v740_v53, %v286_v51  ;;  %v775_v35 = vmul.u32.u64.high %v740_v53, %v286_v51, %v774_v52 }
  0x48   :  { %v105_v24 = vsub.s32 32, %v104_v49  ;;  %v106_v29 = vshll.u32 %v727_v25, %v104_v49  ;;  %v109_v32 = vsub.s32 4294967266, %v104_v49  ;;  %v352_v54 = vadd.s32 1, %v492_v34 }
  0x49   :  { %v204_v25 = vclz %v485_v36  ;;  %v778_v58 = vmul.u32.u64.low %v740_v53, %v282_v30  ;;  %v779_v26 = vmul.u32.u64.high %v740_v53, %v282_v30, %v778_v58  ;;  %vm784_vm3 = vcmp.le.f32.partialorder %v33_v9, 0.7853982 }
  0x4a   :  { %v107_v44 = vshrl.u32 %v89_v50, %v105_v24  ;;  %v110_v46 = vadd.s32 127, %v109_v32  ;;  %v790_v27 = vand.u32 8388607, %v342_v42  ;;  %vm353_vm4 = vcmp.gt.s32.totalorder %v352_v54, 0 }
  0x4b   :  { %v486_v31 = vadd.s32 4294967294, %v204_v25  ;;  %v192_v60 = vadd.s32 %v709_v14, %v715_v17  ;;  %v354_v61 = vsel %vm353_vm4, %v352_v54, 0  ;;  %v122_v62 = vsel %vm784_vm3, 0, %v120_v40 }
  0x4c   :  { %v108_v57 = vor.u32 %v107_v44, %v106_v29  ;;  %v111_v19 = vshll.u32 %v110_v46, 23  ;;  %v294_v9 = vmul.u32 %v740_v53, %v278_v48  ;;  %vm296_vm6 = vc.u32 %v775_v35, %v778_v58 }
  0x4d   :  { %vm487_vm5 = vcmp.lt.s32.totalorder %v486_v31, 0  ;;  %v297_v4 = vadd.s32 1, %v779_v26  ;;  %v356_v5 = vand.u32 31, %v354_v61  ;;  %v350_v14 = vor.u32 8388608, %v790_v27 }
  0x4e   :  { %v112_v34 = vor.u32 4788187, %v111_v19  ;;  %v115_v59 = vcvt.s32.f32 %v108_v57  ;;  %v207_v3 = vsel %vm487_vm5, 0, %v486_v31  ;;  %v802_v18 = vand.u32 3, %v122_v62 }
  0x4f   :  { %v208_v10 = vsub.s32 32, %v207_v3  ;;  %v209_v15 = vshll.u32 %v753_v12, %v207_v3  ;;  %v212_v16 = vsub.s32 4294967266, %v207_v3  ;;  %v298_v20 = vsel %vm296_vm6, %v297_v4, %v779_v26 }
  0x50   :  { %v113_v63 = vand.u32 2147483647, %v112_v34  ;;  %v357_v53 = vsub.s32 32, %v356_v5  ;;  %vm138_vm7 = vcmp.lt.s32.totalorder %v625_v7, 0  ;;  %v222_v21 = vsub.s32 4, %v745_v56 }
  0x51   :  { %v210_v37 = vshrl.u32 %v192_v60, %v208_v10  ;;  %v213_v49 = vadd.s32 127, %v212_v16  ;;  %v299_v22 = vadd.s32 %v298_v20, %v294_v9  ;;  %v807_v24 = vshrl.u32 %v354_v61, 5 }
  0x52   :  { %v116_v17 = vmul.f32 %v115_v59, %v113_v63  ;;  %v359_v12 = vshll.u32 %v585_v39, %v356_v5  ;;  %v362_v29 = vshll.u32 %v586_v41, %v356_v5  ;;  %vm813_vm8 = vcmp.le.f32.partialorder %v136_v11, 0.7853982 }
  0x53   :  { %v211_v38 = vor.u32 %v210_v37, %v209_v15  ;;  %v214_v40 = vshll.u32 %v213_v49, 23  ;;  %v300_v36 = vadd.s32 536870912, %v299_v22  ;;  %v360_v30 = vshrl.u32 %v586_v41, %v357_v53 }
  0x54   :  { %v117_v23 = vxor.u32 2147483648, %v116_v17  ;;  %v363_v46 = vshrl.u32 %v587_v43, %v357_v53  ;;  %v365_v48 = vshll.u32 %v587_v43, %v356_v5  ;;  %v366_v51 = vshrl.u32 %v588_v45, %v357_v53 }
  0x55   :  { %v215_v25 = vor.u32 4788187, %v214_v40  ;;  %v218_v52 = vcvt.s32.f32 %v211_v38  ;;  %v826_v54 = vshrl.u32 %v300_v36, 30  ;;  %v368_v41 = vshll.u32 %v588_v45, %v356_v5 }
  0x56   :  { %v118_v44 = vsel %vm35_vm13, %v117_v23, %v116_v17  ;;  %v369_v57 = vshrl.u32 %v589_v47, %v357_v53  ;;  %vm374_vm9 = vcmp.lt.s32.totalorder %v807_v24, 1  ;;  %v361_v26 = vor.u32 %v360_v30, %v359_v12 }
  0x57   :  { %v121_v11 = vsel %vm784_vm3, %v623_v6, %v118_v44  ;;  %v216_v19 = vand.u32 2147483647, %v215_v25  ;;  %v302_v43 = vshll.u32 %v826_v54, 30  ;;  %v364_v31 = vor.u32 %v363_v46, %v362_v29 }
  0x58   :  { %520 = vcosq.f32 %v121_v11  ;;  %v370_v27 = vor.u32 %v369_v57, %v368_v41  ;;  %v371_v50 = vshll.u32 %v589_v47, %v356_v5  ;;  %v372_v34 = vshrl.u32 %v590_v55, %v357_v53 }
  0x59   :  { %522 = vsinq.f32 %v121_v11  ;;  %vm128_vm10 = vcmp.eq.s32.totalorder %v802_v18, 0  ;;  %v219_v59 = vmul.f32 %v218_v52, %v216_v19  ;;  %v835_v60 = vsub.s32 %v299_v22, %v302_v43 }
  0x5a   :  { %v358_v45 = vshrl.u32 %v585_v39, %v357_v53  ;;  %v367_v61 = vor.u32 %v366_v51, %v365_v48  ;;  %vm131_vm11 = vcmp.eq.s32.totalorder %v802_v18, 2  ;;  %v223_v62 = vsel %vm138_vm7, %v222_v21, %v745_v56 }
  0x5b   :  { %vm376_vm12 = vcmp.lt.s32.totalorder %v807_v24, 3  ;;  %vm377_vm13 = vcmp.lt.s32.totalorder %v807_v24, 4  ;;  %vm125_vm14 = vweird.f32 %v623_v6  ;;  %v220_v47 = vxor.u32 2147483648, %v219_v59 }
  0x5c   :  { %v305_v55 = vsub.s32 0, %v835_v60  ;;  %v373_v9 = vor.u32 %v372_v34, %v371_v50  ;;  %v379_v39 = vsel %vm377_vm13, %v367_v61, 2102212464  ;;  %vm375_vm15 = vcmp.lt.s32.totalorder %v807_v24, 2 }
  0x5d   :  { %v382_v63 = vsel %vm374_vm9, %v361_v26, %v364_v31  ;;  %v383_v56 = vsel %vm377_vm13, %v370_v27, 920167782  ;;  %v390_v3 = vshll.u32 %v350_v14, 8  ;;  %v221_v4 = vsel %vm138_vm7, %v220_v47, %v219_v59 }
  0x5e   :  { %v225_v5 = vsel %vm813_vm8, 0, %v223_v62  ;;  %v489_v10 = vmin.u32 %v305_v55, %v835_v60  ;;  %v378_v15 = vsel %vm374_vm9, %v358_v45, %v361_v26  ;;  %v224_v16 = vsel %vm813_vm8, %v625_v7, %v221_v4 }
  0x5f   :  { %v380_v17 = vsel %vm376_vm12, %v364_v31, %v379_v39  ;;  %v384_v14 = vsel %vm376_vm12, %v367_v61, %v383_v56  ;;  %v386_v20 = vsel %vm374_vm9, %v364_v31, %v367_v61  ;;  %524 = vcosq.f32 %v224_v16 }
  0x60   :  { %v307_v53 = vclz %v489_v10  ;;  %v385_v37 = vsel %vm375_vm15, %v382_v63, %v384_v14  ;;  %v387_v49 = vsel %vm377_vm13, %v373_v9, 1326507024  ;;  %526 = vsinq.f32 %v224_v16 }
  0x61   :  { %v388_v22 = vsel %vm376_vm12, %v370_v27, %v387_v49  ;;  %v875_v23 = vmul.u32.u64.low %v390_v3, %v385_v37  ;;  %v876_v12 = vmul.u32.u64.high %v390_v3, %v385_v37, %v875_v23  ;;  %v381_v40 = vsel %vm375_vm15, %v378_v15, %v380_v17 }
  0x62   :  { %v521_v21 = vpop.eup %520  ;;  %v490_v38 = vadd.s32 4294967294, %v307_v53  ;;  %v389_v36 = vsel %vm375_vm15, %v386_v20, %v388_v22  ;;  %vm127_vm0 = vcmp.lt.s32.totalorder %v802_v18, 2  ;;  %v229_v51 = vand.u32 3, %v225_v5 }
  0x63   :  { %v523_v29 = vpop.eup %522  ;;  %v132_v32 = vxor.u32 2147483648, %v521_v21  ;;  %v884_v44 = vmul.u32.u64.low %v390_v3, %v389_v36  ;;  %v885_v46 = vmul.u32.u64.high %v390_v3, %v389_v36, %v884_v44  ;;  %v295_v11 = vadd.s32 %v778_v58, %v775_v35 }
  0x64   :  { %v129_v30 = vxor.u32 2147483648, %v523_v29  ;;  %vm491_vm1 = vcmp.lt.s32.totalorder %v490_v38, 0  ;;  %v397_v24 = vmul.u32 %v390_v3, %v381_v40  ;;  %v400_v41 = vadd.s32 1, %v876_v12 }
  0x65   :  { %v133_v48 = vsel %vm131_vm11, %v132_v32, %v523_v29  ;;  %v310_v52 = vsel %vm491_vm1, 0, %v490_v38  ;;  %vm399_vm2 = vc.u32 %v885_v46, %v875_v23  ;;  %vm453_vm3 = vcmp.lt.f32.partialorder %v614_v0, 5.0 }
  0x66   :  { %v130_v25 = vsel %vm128_vm10, %v521_v21, %v129_v30  ;;  %v311_v19 = vsub.s32 32, %v310_v52  ;;  %v312_v43 = vshll.u32 %v835_v60, %v310_v52  ;;  %v315_v26 = vsub.s32 4294967266, %v310_v52 }
  0x67   :  { %v134_v57 = vsel %vm127_vm0, %v130_v25, %v133_v48  ;;  %v401_v18 = vsel %vm399_vm2, %v400_v41, %v876_v12  ;;  %vm234_vm4 = vcmp.eq.s32.totalorder %v229_v51, 2  ;;  %vm230_vm5 = vcmp.lt.s32.totalorder %v229_v51, 2 }
  0x68   :  { %v135_v31 = vsel %vm125_vm14, nan, %v134_v57  ;;  %v313_v35 = vshrl.u32 %v295_v11, %v311_v19  ;;  %v316_v58 = vadd.s32 127, %v315_v26  ;;  %v402_v50 = vadd.s32 %v401_v18, %v397_v24 }
  0x69   :  { %v445_v27 = vadd.f32 1.0, %v135_v31  ;;  %v525_v34 = vpop.eup %524  ;;  %vm231_vm6 = vcmp.eq.s32.totalorder %v229_v51, 0  ;;  %vm228_vm7 = vweird.f32 %v625_v7  ;;  %vm241_vm8 = vcmp.lt.s32.totalorder %v627_v8, 0 }
  0x6a   :  { %v314_v59 = vor.u32 %v313_v35, %v312_v43  ;;  %v317_v45 = vshll.u32 %v316_v58, 23  ;;  %v527_v61 = vpop.eup %526  ;;  %v235_v6 = vxor.u32 2147483648, %v525_v34  ;;  %v403_v62 = vadd.s32 536870912, %v402_v50 }
  0x6b   :  { %v449_v60 = vmul.f32 0.5, %v445_v27  ;;  %v232_v47 = vxor.u32 2147483648, %v527_v61  ;;  %vm908_vm9 = vcmp.le.f32.partialorder %v239_v33, 0.7853982  ;;  %v325_v20 = vsub.s32 4, %v826_v54 }
  0x6c   :  { %v318_v55 = vor.u32 4788187, %v317_v45  ;;  %v321_v9 = vcvt.s32.f32 %v314_v59  ;;  %v236_v63 = vsel %vm234_vm4, %v235_v6, %v527_v61  ;;  %v902_v56 = vshrl.u32 %v403_v62, 30 }
  0x6d   :  { %v457_v39 = vsel %vm453_vm3, %v449_v60, 0.0  ;;  %v233_v0 = vsel %vm231_vm6, %v525_v34, %v232_v47  ;;  %vm454_vm10 = vcmp.lt.f32.partialorder %v616_v1, 5.0  ;;  %v326_v12 = vsel %vm241_vm8, %v325_v20, %v826_v54 }
  0x6e   :  { %461 = vst [vmem:[#allocation5] sm:$0xff] %v457_v39  ;;  %v319_v3 = vand.u32 2147483647, %v318_v55  ;;  %v237_v4 = vsel %vm230_vm5, %v233_v0, %v236_v63  ;;  %v405_v5 = vshll.u32 %v902_v56, 30  ;;  %v328_v32 = vsel %vm908_vm9, 0, %v326_v12 }
  0x6f   :  { %v238_v10 = vsel %vm228_vm7, nan, %v237_v4  ;;  %v398_v1 = vadd.s32 %v875_v23, %v885_v46  ;;  %v332_v40 = vand.u32 3, %v328_v32  ;;  %vm331_vm15 = vweird.f32 %v627_v8 }
  0x70   :  { %v322_v15 = vmul.f32 %v321_v9, %v319_v3  ;;  %v406_v16 = vsub.s32 %v402_v50, %v405_v5  ;;  %v446_v17 = vadd.f32 1.0, %v238_v10  ;;  %vm344_vm0 = vcmp.lt.s32.totalorder %v641_v28, 0 }
  0x71   :  { %vm337_vm12 = vcmp.eq.s32.totalorder %v332_v40, 2  ;;  %vm334_vm13 = vcmp.eq.s32.totalorder %v332_v40, 0  ;;  %vm333_vm14 = vcmp.lt.s32.totalorder %v332_v40, 2  ;;  %vm455_vm1 = vcmp.lt.f32.partialorder %v618_v2, 5.0 }
  0x72   :  { %v323_v7 = vxor.u32 2147483648, %v322_v15  ;;  %v408_v53 = vsub.s32 0, %v406_v16  ;;  %v450_v37 = vmul.f32 0.5, %v446_v17  ;;  %vm343_vm2 = vcmp.le.f32.partialorder %v342_v42, 0.7853982 }
  0x73   :  { %v428_v50 = vsub.s32 4, %v902_v56  ;;  %vm434_vm6 = vweird.f32 %v641_v28  ;;  %vm456_vm7 = vcmp.lt.f32.partialorder %v633_v13, 5.0 }
  0x74   :  { %v324_v49 = vsel %vm241_vm8, %v323_v7, %v322_v15  ;;  %v493_v22 = vmin.u32 %v408_v53, %v406_v16  ;;  %v458_v33 = vsel %vm454_vm10, %v450_v37, 0.0 }
  0x75   :  { %v327_v21 = vsel %vm908_vm9, %v627_v8, %v324_v49  ;;  %462 = vst [vmem:[#allocation5 + $0x8] sm:$0xff] %v458_v33  ;;  %v429_v60 = vsel %vm344_vm0, %v428_v50, %v902_v56 }
  0x76   :  { %528 = vcosq.f32 %v327_v21  ;;  %v410_v29 = vclz %v493_v22  ;;  %v431_v61 = vsel %vm343_vm2, 0, %v429_v60 }
  0x77   :  { %530 = vsinq.f32 %v327_v21  ;;  %v435_v6 = vand.u32 3, %v431_v61 }
  0x78   :  { %v494_v38 = vadd.s32 4294967294, %v410_v29 }
  0x79   :  { %vm440_vm3 = vcmp.eq.s32.totalorder %v435_v6, 2  ;;  %vm437_vm4 = vcmp.eq.s32.totalorder %v435_v6, 0  ;;  %vm436_vm5 = vcmp.lt.s32.totalorder %v435_v6, 2 }
  0x7a   :  { %vm495_vm11 = vcmp.lt.s32.totalorder %v494_v38, 0 }
  0x7b   :  { %v413_v36 = vsel %vm495_vm11, 0, %v494_v38 }
  0x7c   :  { %v414_v30 = vsub.s32 32, %v413_v36  ;;  %v415_v44 = vshll.u32 %v406_v16, %v413_v36  ;;  %v418_v48 = vsub.s32 4294967266, %v413_v36 }
  0x7e   :  { %v416_v51 = vshrl.u32 %v398_v1, %v414_v30  ;;  %v419_v54 = vadd.s32 127, %v418_v48 }
  0x80   :  { %v529_v11 = vpop.eup %528  ;;  %v417_v24 = vor.u32 %v416_v51, %v415_v44  ;;  %v420_v41 = vshll.u32 %v419_v54, 23 }
  0x81   :  { %v531_v25 = vpop.eup %530  ;;  %v338_v52 = vxor.u32 2147483648, %v529_v11 }
  0x82   :  { %v335_v57 = vxor.u32 2147483648, %v531_v25  ;;  %v421_v46 = vor.u32 4788187, %v420_v41  ;;  %v424_v19 = vcvt.s32.f32 %v417_v24 }
  0x83   :  { %v339_v23 = vsel %vm337_vm12, %v338_v52, %v531_v25 }
  0x84   :  { %v336_v43 = vsel %vm334_vm13, %v529_v11, %v335_v57  ;;  %v422_v31 = vand.u32 2147483647, %v421_v46 }
  0x85   :  { %v340_v26 = vsel %vm333_vm14, %v336_v43, %v339_v23 }
  0x86   :  { %v341_v35 = vsel %vm331_vm15, nan, %v340_v26  ;;  %v425_v58 = vmul.f32 %v424_v19, %v422_v31 }
  0x87   :  { %v447_v18 = vadd.f32 1.0, %v341_v35 }
  0x88   :  { %v426_v27 = vxor.u32 2147483648, %v425_v58 }
  0x89   :  { %v451_v8 = vmul.f32 0.5, %v447_v18 }
  0x8a   :  { %v427_v34 = vsel %vm344_vm0, %v426_v27, %v425_v58 }
  0x8b   :  { %v459_v59 = vsel %vm455_vm1, %v451_v8, 0.0  ;;  %v430_v45 = vsel %vm343_vm2, %v641_v28, %v427_v34 }
  0x8c   :  { %463 = vst [vmem:[#allocation5 + $0x10] sm:$0xff] %v459_v59  ;;  %532 = vcosq.f32 %v430_v45 }
  0x8d   :  { %534 = vsinq.f32 %v430_v45 }
  0x96   :  { %v533_v62 = vpop.eup %532 }
  0x97   :  { %v535_v2 = vpop.eup %534  ;;  %v441_v42 = vxor.u32 2147483648, %v533_v62 }
  0x98   :  { %v438_v47 = vxor.u32 2147483648, %v535_v2 }
  0x99   :  { %v442_v55 = vsel %vm440_vm3, %v441_v42, %v535_v2 }
  0x9a   :  { %v439_v9 = vsel %vm437_vm4, %v533_v62, %v438_v47 }
  0x9b   :  { %v443_v39 = vsel %vm436_vm5, %v439_v9, %v442_v55 }
  0x9c   :  { %v444_v63 = vsel %vm434_vm6, nan, %v443_v39 }
  0x9d   :  { %v448_v0 = vadd.f32 1.0, %v444_v63 }
  0x9f   :  { %v452_v56 = vmul.f32 0.5, %v448_v0 }
  0xa1   :  { %v460_v3 = vsel %vm456_vm7, %v452_v56, 0.0 }
  0xa2   :  { %464 = vst [vmem:[#allocation5 + $0x18] sm:$0xff] %v460_v3 }
  0xa3   :  { %569 = shalt.err (!%p566_p12)
}
  0xa4   :  { %s570_s22 = scalar_lea.hbm %s945_s1, 512 }
  0xa5   :  { %p571_p13 = scmp.ne.s32.totalorder %s945_s1, %s570_s22  ;;  %p574_p0 = scmp.lt.u32.totalorder %s570_s22, %s945_s1 }
  0xa7   :  { %p576_p1 = pnand %p574_p0, %p571_p13 }
  0xa9   :  { %579 = shalt.err (!%p576_p1)
}
  0xaa   :  { %474 = dma.vmem_to_hbm [thread:$0]  %s472_s18, 512, %s945_s1, [#allocation4]  }
  0xab   :  { %582 = dma.done.wait [#allocation4], 512  }
  0xac   :  { %583 = vsyncadd [#allocation4], 4294966784 }
  0xad   :  { %478 = vsyncpa [#allocation3], 1 }
  0xae   :  { %479 = vsyncpa [#allocation4], 1 }

</bundles_post_ra>
